<compile_context>
chip_gen: v6e
topology: v6e:2x2x1
jax: 0.10.0
libtpu: 0.0.40
codegen_flags: <defaults>
</compile_context>

<pallas_src>
import functools

import jax
import jax.numpy as jnp
from jax.experimental import pallas as pl
from jax.experimental.pallas import tpu as pltpu


# ------------------------------------------------------------------ pass 1 --
def colsum_kernel(x_ref, out_ref):
    """Per-tile column sums: out[i] = sum over rows of x tile i."""
    x = x_ref[...].astype(jnp.float32)                       # (tile1, F)
    out_ref[...] = jnp.sum(x, axis=0, keepdims=True)[None]   # (1, 1, F)


# ------------------------------------------------------------------ pass 2 --
def lpca_tile_kernel(*refs, dropout_p, tile_n, n_valid, needs_mask):
    if dropout_p > 0.0:
        seed_ref, mean_ref, x_ref, w_ref, wt_ref, xrec_ref, lpart_ref = refs
    else:
        mean_ref, x_ref, w_ref, wt_ref, xrec_ref, lpart_ref = refs
        seed_ref = None

    x = x_ref[...].astype(jnp.float32)            # (tile_n, F)  streamed
    w = w_ref[...].astype(jnp.float32)            # (F, P)       resident
    wt = wt_ref[...].astype(jnp.float32)          # (P, F)       resident (explicit W^T)
    xc = x - mean_ref[...]                        # mean-centered

    if needs_mask:
        # Zero padded tail rows so they contribute nothing to loss / x_rec.
        row = (pl.program_id(0) * tile_n
               + jax.lax.broadcasted_iota(jnp.int32, (tile_n, 1), 0))
        xc = jnp.where(row < n_valid, xc, 0.0)

    # hidden = Xc @ W (pre-dropout; the torch loss is computed from Cov/W only).
    hidden = jnp.dot(xc, w, preferred_element_type=jnp.float32)      # (tile_n, P)
    # Pre-dropout reconstruction via the resident W^T (no per-tile relayout).
    rec0 = jnp.dot(hidden, wt, preferred_element_type=jnp.float32)   # (tile_n, F)

    # Cancellation-free loss partial: sum(xc * (xc - xc W W^T)).
    part = jnp.sum(xc * (xc - rec0))
    lpart_ref[...] = jnp.full(lpart_ref.shape, part, dtype=jnp.float32)

    if dropout_p > 0.0:
        # Inverted dropout on hidden (dist=None branch).  Raw uint32 bits vs a
        # uint32 threshold: no int/float conversion.
        # TODO(synk): pattern reseeds per tile (seed + program_id), so it is not
        # reproducible across tile-size choices.
        pltpu.prng_seed(seed_ref[0, 0] + pl.program_id(0))
        bits = pltpu.bitcast(pltpu.prng_random_bits(hidden.shape), jnp.uint32)
        thresh = jnp.uint32(min(int(round(dropout_p * (1 << 32))), (1 << 32) - 1))
        hidden = jnp.where(bits >= thresh, hidden, 0.0) * (1.0 / (1.0 - dropout_p))
        x_rec = jnp.dot(hidden, wt, preferred_element_type=jnp.float32)
    else:
        x_rec = rec0

    xrec_ref[...] = x_rec.astype(xrec_ref.dtype)


# -------------------------------------------------------------- tiling utils --
def _vmem_budget_bytes():
    """Generation-aware per-core VMEM budget (headroom under physical VMEM)."""
    phys = 64 * 1024 * 1024                       # conservative: v7x per-TC VMEM
    try:
        phys = int(pltpu.get_tpu_info().vmem_capacity_bytes)
    except Exception:
        pass
    # ~40 MiB on v7x (64 MiB/TC), ~80 MiB on v5e/v6e (128 MiB).
    return min(int(phys * 0.625), 100 * 1024 * 1024)


def _choose_tile_n(n, f, p, budget, target_bytes=1 << 20):
    """Rows per pass-2 step: ~target_bytes of HBM traffic per step
    (read x tile + write x_rec tile = 2*tile*f*4 B) to amortize the ~0.35 us
    per-step overhead; capped by VMEM and by num_tiles >= 2 so the parallel
    grid axis can split across v7x's two TensorCores."""
    resident = 2 * f * p * 4 + f * 4 + 4096
    usable = max(1 << 20, budget - resident - (4 << 20))
    ideal = -(-target_bytes // (8 * f))           # 2 * tile * f * 4  >= target
    cap_vmem = usable // (16 * f)                 # 4 (tile, f) f32 buffers in flight
    tile = max(8, min(ideal, cap_vmem))
    if n >= 16:
        tile = min(tile, (n // 2) // 8 * 8)       # keep >= 2 tiles
    tile = max(8, tile // 8 * 8)
    if tile >= n:                                 # tiny batch: one full-extent block
        return n, n
    # Prefer a divisor of n near the target (avoids a padded copy of x).
    t = tile
    while t >= 8:
        if 4 * t < tile:
            break
        if n % t == 0:
            return t, n
        t -= 8
    # Awkward n: pad to a multiple of `tile`, mask the tail rows in-kernel.
    n_pad = -(-n // tile) * tile
    return tile, n_pad


def _choose_pass1_tile(tile_n, num_tiles, f, budget):
    """Pass-1 (column-sum) tile, decoupled from pass 2: no matmul, no resident W,
    no output tile -> use a larger tile (a multiple of tile_n that divides the
    padded batch so both passes share the same padded array)."""
    usable = max(1 << 20, budget - (4 << 20))
    best = 1
    for d in range(1, num_tiles + 1):
        if num_tiles % d:
            continue
        if num_tiles >= 2 and num_tiles // d < 2:
            continue                              # keep >= 2 steps for 2 TCs
        if 2 * tile_n * d * f * 4 > usable // 2:
            continue
        if tile_n * d * f * 4 > (4 << 20):        # ~4 MiB read/step is plenty
            continue
        best = d
    return tile_n * best


# ------------------------------------------------------------------ wrapper --
def lpca_forward(x_feat, W, *, dropout_p=0.0, seed=0, tile_n=None,
                 x_rec_dtype=jnp.float32):
    assert 0.0 <= dropout_p < 1.0
    N, F = x_feat.shape
    F2, P = W.shape
    assert F == F2

    budget = _vmem_budget_bytes()
    if tile_n is None:
        tile_n, n_pad = _choose_tile_n(N, F, P, budget)
    else:
        assert N % tile_n == 0, "explicit tile_n must divide N"
        n_pad = N
    num_tiles = n_pad // tile_n
    needs_mask = n_pad != N

    x_in = x_feat
    if needs_mask:
        # Robustness fallback for awkward N: zero-pad rows, masked in-kernel.
        x_in = jnp.pad(x_feat, ((0, n_pad - N), (0, 0)))

    tile1 = _choose_pass1_tile(tile_n, num_tiles, F, budget)
    num_tiles1 = n_pad // tile1

    # Scoped-VMEM limit sized from the actual buffers (double-buffered tiles +
    # residents) instead of a fixed constant; stays within the per-gen budget.
    need = max(
        4 * tile_n * F * 4 + 2 * (2 * F * P + F + 128) * 4,   # pass 2
        2 * tile1 * F * 4 + 2 * F * 4,                        # pass 1
    )
    vmem_limit = int(min(budget, max(16 << 20, need + (4 << 20))))
    cparams = pltpu.CompilerParams(
        dimension_semantics=("parallel",),
        vmem_limit_bytes=vmem_limit,
    )

    # ---- pass 1: per-tile column sums; tiny cross-tile reduce done outside ---
    colsums = pl.pallas_call(
        colsum_kernel,
        grid=(num_tiles1,),
        out_shape=jax.ShapeDtypeStruct((num_tiles1, 1, F), jnp.float32),
        in_specs=[pl.BlockSpec((tile1, F), lambda i: (i, 0))],
        out_specs=pl.BlockSpec((1, 1, F), lambda i: (i, 0, 0)),
        compiler_params=cparams,
    )(x_in)
    mean = jnp.sum(colsums[:, 0, :], axis=0, keepdims=True) / jnp.float32(N)

    # ---- pass 2: stream (tile_n, F) blocks; mean, W, W^T stay resident -------
    kernel = functools.partial(
        lpca_tile_kernel, dropout_p=float(dropout_p), tile_n=tile_n,
        n_valid=N, needs_mask=needs_mask)

    w_t = W.T                                     # explicit resident W^T, (P, F)

    in_args = [mean, x_in, W, w_t]
    in_specs = [
        pl.BlockSpec((1, F), lambda i: (0, 0)),          # mean (resident)
        pl.BlockSpec((tile_n, F), lambda i: (i, 0)),     # x tile (streamed)
        pl.BlockSpec((F, P), lambda i: (0, 0)),          # W (resident)
        pl.BlockSpec((P, F), lambda i: (0, 0)),          # W^T (resident)
    ]
    if dropout_p > 0.0:
        # Seed operand + PRNG path only exist when dropout is actually on.
        in_args = [jnp.array([[seed]], dtype=jnp.int32)] + in_args
        in_specs = [pl.BlockSpec(memory_space=pltpu.SMEM)] + in_specs

    x_rec, loss_parts = pl.pallas_call(
        kernel,
        grid=(num_tiles,),
        out_shape=(
            jax.ShapeDtypeStruct((n_pad, F), x_rec_dtype),
            jax.ShapeDtypeStruct((num_tiles, 1, 128), jnp.float32),
        ),
        in_specs=in_specs,
        out_specs=(
            pl.BlockSpec((tile_n, F), lambda i: (i, 0)),     # x_rec tile
            pl.BlockSpec((1, 1, 128), lambda i: (i, 0, 0)),  # per-tile loss partial
        ),
        compiler_params=cparams,
    )(*in_args)

    if needs_mask:
        x_rec = x_rec[:N]
    lpca_loss = jnp.sum(loss_parts[:, 0, 0]) / jnp.float32(N)
    return x_rec, lpca_loss


# ---------------------------------------------------------------- reference --
def orthogonal_init(key, rows, cols):
    """Deterministic equivalent of nn.init.orthogonal_ for a (rows, cols) matrix."""
    a = jax.random.normal(key, (max(rows, cols), min(rows, cols)), dtype=jnp.float32)
    q, r = jnp.linalg.qr(a)
    d = jnp.sign(jnp.diag(r))
    q = q * d[None, :]
    if rows < cols:
        q = q.T
    return q[:rows, :cols]


def lpca_reference(x_feat, W):
    """Pure-JAX reference mirroring the PyTorch forward (dist=None, p=0),
    using the ORIGINAL trace formula so it validates the algebraic rewrite."""
    hp = jax.lax.Precision.HIGHEST
    xc = x_feat - jnp.mean(x_feat, axis=0)
    cov = jnp.dot(xc.T, xc, precision=hp)
    hidden = jnp.dot(xc, W, precision=hp)
    x_rec = jnp.dot(hidden, W.T, precision=hp)
    wwt_cov = jnp.dot(jnp.dot(W, W.T, precision=hp), cov, precision=hp)
    loss = jnp.trace(cov - wwt_cov) / x_rec.shape[0]
    return x_rec, loss


if __name__ == "__main__":
    key = jax.random.PRNGKey(0)
    k_x, k_w = jax.random.split(key)

    N, feat_dim, num_pc = 512, 128, 32            # small synthetic shapes
    x_feat = jax.random.normal(k_x, (N, feat_dim), dtype=jnp.float32)
    W = orthogonal_init(k_w, feat_dim, num_pc)    # nn.init.orthogonal_ equivalent

    # tile_n auto-picked (bandwidth-aware; 2 tiles here so v7x's 2 TCs both work).
    x_rec, lpca_loss = lpca_forward(x_feat, W, dropout_p=0.0, seed=0)
    jax.block_until_ready((x_rec, lpca_loss))

    x_rec_ref, loss_ref = lpca_reference(x_feat, W)
    assert x_rec.shape == (N, feat_dim)
    assert jnp.allclose(x_rec, x_rec_ref, rtol=1e-3, atol=1e-3), "x_rec mismatch"
    assert jnp.allclose(lpca_loss, loss_ref, rtol=1e-3, atol=1e-2), "loss mismatch"

    print("KERNEL_OK")
</pallas_src>

<mosaic_0001>
module attributes {stable_mosaic.version = 11 : i64} {
  func.func @colsum_kernel(%arg0: i32, %arg1: memref<256x128xf32, #tpu.memory_space<vmem>>, %arg2: memref<1x1x128xf32, #tpu.memory_space<vmem>>) attributes {dimension_semantics = [#tpu.dimension_semantics<parallel>], iteration_bounds = array<i64: 2>, scalar_prefetch = 0 : i64, scratch_operands = 0 : i64, tpu.core_type = #tpu.core_type<tc>, window_params = [{transform_indices = @transform_0, window_bounds = array<i64: 256, 128>}, {transform_indices = @transform_1, window_bounds = array<i64: 1, 1, 128>}]} {
    %c0 = arith.constant 0 : index
    %c0_0 = arith.constant 0 : index
    %0 = vector.load %arg1[%c0, %c0_0] : memref<256x128xf32, #tpu.memory_space<vmem>>, vector<256x128xf32>
    %cst = arith.constant dense<0.000000e+00> : vector<128xf32>
    %1 = vector.multi_reduction <add>, %0, %cst [0] : vector<256x128xf32> to vector<128xf32>
    %2 = vector.shape_cast %1 : vector<128xf32> to vector<1x128xf32>
    %3 = vector.shape_cast %2 : vector<1x128xf32> to vector<1x1x128xf32>
    %c0_1 = arith.constant 0 : index
    %c0_2 = arith.constant 0 : index
    %c0_3 = arith.constant 0 : index
    %4 = vector.load %arg2[%c0_1, %c0_2, %c0_3] : memref<1x1x128xf32, #tpu.memory_space<vmem>>, vector<1x1x128xf32>
    tpu.vector_store %arg2[%c0_1, %c0_2, %c0_3], %3 {strides = array<i32>} : memref<1x1x128xf32, #tpu.memory_space<vmem>>, vector<1x1x128xf32>,
    return
  }
  func.func @transform_0(%arg0: i32) -> (i32, i32) {
    %c0_i32 = arith.constant 0 : i32
    %c0_i32_0 = arith.constant 0 : i32
    return %arg0, %c0_i32 : i32, i32
  }
  func.func @transform_1(%arg0: i32) -> (i32, i32, i32) {
    %c0_i32 = arith.constant 0 : i32
    %c0_i32_0 = arith.constant 0 : i32
    %c0_i32_1 = arith.constant 0 : i32
    return %arg0, %c0_i32, %c0_i32_0 : i32, i32, i32
  }
}

</mosaic_0001>

<bundles_post_ra>
// kernel: tpu_custom_call.1
= control target key start
LH: loop header
LB: loop body
LE: loop exit
PB: predicated region body
PF: predicated region fallthrough
CT: control target
= control target key end

     0   :  { %6 = vsyncpa [#allocation3], 0  ;;  %s627_s0 = inlined_call_operand.hbm [shape: f32[512,128], index: 0, kind: input, shape index: {}]   ;;  %s628_s1 = inlined_call_operand.hbm [shape: f32[2,1,128], index: 1, kind: output, shape index: {}]  }
   0x1   :  { %8 = vsyncpa [#allocation3 + $0x1], 0 }
   0x2   :  { %9 = vsyncpa [#allocation4], 0 }
   0x3   :  { %11 = vsyncpa [#allocation4 + $0x1], 0  ;;  %s452_s6 = smov 0   ;;  %s454_s7 = smov 0  }
   0x4   :  { %s456_s8 = smov 0   ;;  %s458_s9 = smov 0  }
   0x5 LB: > { %s473_s10 = sadd.s32 4294967295, %s436_s9   ;;  %s284_s11 = sadd.s32 4294967294, %s436_s9   ;;  %s436_s9 = sphi %s458_s9, %s643_s9   ;;  %s432_s8 = sphi %s456_s8, %s642_s8   ;;  %s428_s7 = sphi %s454_s7, %s641_s7   ;;  %s424_s6 = sphi %s452_s6, %s640_s6  }
   0x6   : > { %s477_s12 = sadd.s32 1, %s436_s9   ;;  %s24_s13 = sadd.s32 1, %s432_s8 }
   0x7   : > { %s21_s14 = ssub.s32 %s436_s9, %s477_s12  ;;  %p31_p0 = scmp.ne.s32.totalorder %s432_s8, %s428_s7 }
   0x8   : > { %p22_p1 = scmp.eq.s32.totalorder %s21_s14, 0  ;;  %p32_p2 = scmp.eq.s32.totalorder %s436_s9, 0 }
   0x9   : > { %p37_p3 = scmp.ne.s32.totalorder %s428_s7, %s424_s6  ;;  %p38_p4 = scmp.eq.s32.totalorder %s473_s10, 0 }
   0xa   : > { %s489_s15 = scalar_select %p22_p1, %s432_s8, %s24_s13  }
   0xb   : > { %p491_p5 = por %p32_p2, %p31_p0  ;;  %p495_p6 = por %p38_p4, %p37_p3 }
   0xc   : > { %p61_p7 = scmp.eq.s32.totalorder %s473_s10, 1  ;;  %p67_p8 = scmp.eq.s32.totalorder %s284_s11, 1 }
   0xd   : > { %s632_s17 = scalar_select %p495_p6, 1, 0 }
   0xe   : > { %p308_p10 = scmp.lt.s32.totalorder %s436_s9, 2  ;;  %p502_p11 = por %p61_p7, %p31_p0 }
   0xf   : > { %p506_p12 = por %p67_p8, %p37_p3  ;;  %s87_s20 = sand.u32 1, %s432_s8  }
  0x10   : > { %s633_s18 = scalar_select %p502_p11, 1, 0 }
  0x11   : > { %s634_s19 = scalar_select %p506_p12, 1, 0 }
  0x12   : > { %s295_s21 = sshll.u32 %s436_s9, 12  ;;  %s287_s22 = sshll.u32 %s87_s20, 8 }
  0x13   : > { %s515_s25 = scalar_lea.hbm %s627_s0, %s295_s21  ;;  %s91_s26 = scalar_lea.vmem [#allocation2], %s287_s22 }
  0x14   : > { %s98_s27 = sshll.u32 %s91_s26, 4  ;;  %p519_p13 = pnand %p308_p10, %p491_p5  ;;  %s523_s27 = int_to_ptr.vmem [resolvable:$true] %s98_s27 }
  0x15   : > { %s525_s29 = scalar_lea.sflag [#allocation3], %s87_s20  ;;  %s344_s30 = scalar_lea.hbm %s515_s25, 4096 }
  0x16   : > { %p345_p0 = scmp.ne.s32.totalorder %s515_s25, %s344_s30  ;;  %p346_p1 = pneg %p519_p13 }
  0x17   : > { %s349_s4 = scalar_lea.hbm %s627_s0, 8192  ;;  %p350_p4 = scmp.lt.s32.totalorder %s515_s25, %s627_s0 }
  0x18   : > { %p347_p2 = pnand %p346_p1, %p345_p0  ;;  %p351_p5 = scmp.lt.s32.totalorder %s349_s4, %s344_s30 }
  0x1a   : > { %p348_p3 = pneg %p347_p2  ;;  %p352_p7 = por %p351_p5, %p350_p4 }
  0x1c   : > { %p353_p8 = pnand %p352_p7, %p348_p3 }
  0x1e   : > { %356 = shalt.err (!%p353_p8)
}
  0x1f   : > { %s357_s13 = scalar_lea.vmem %s523_s27, 4096  ;;  %s438_s14 = smov [#allocation2]  }
  0x20   : > { %p358_p10 = scmp.ne.s32.totalorder %s523_s27, %s357_s13  ;;  %s362_s16 = sshll.u32 %s438_s14, 4  ;;  %s363_s16 = int_to_ptr.vmem [resolvable:$false] %s362_s16 }
  0x21   : > { %s364_s20 = scalar_lea.vmem %s363_s16, 8192  ;;  %p365_p2 = scmp.lt.s32.totalorder %s523_s27, %s363_s16 }
  0x22   : > { %p360_p9 = pnand %p358_p10, %p346_p1  ;;  %p366_p12 = scmp.lt.s32.totalorder %s364_s20, %s357_s13 }
  0x24   : > { %p361_p0 = pneg %p360_p9  ;;  %p367_p11 = por %p366_p12, %p365_p2 }
  0x26   : > { %p368_p6 = pnand %p367_p11, %p361_p0 }
  0x28   : > { %371 = shalt.err (!%p368_p6)
}
  0x29   : > { %s439_s21 = smov 128   ;;  %s440_s22 = smov 8  }
  0x2a   : > { %303 = dma.hbm_to_vmem [thread:$0]  (!%p519_p13), %s515_s25, 4096, %s523_s27, %s525_s29, %s439_s21, %s439_s21, %s440_s22  }
  0x2b   : > { %p290_p9 = scmp.ge.s32.totalorder %s436_s9, 1  ;;  %p106_p1 = scmp.lt.s32.totalorder %s436_s9, 3 }
  0x2d   : > { %p107_p3 = pnand %p290_p9, %p106_p1 }
  0x2e   : > { %s549_s23 = sand.u32 (!%p107_p3), 1, %s428_s7   ;;  %p636_p6 = scmp.ne.s32.totalorder (!%p107_p3), %s632_s17, 0 }
  0x2f   : > { %110 = sbr.rel (%p107_p3) target bundleno = 141 (0x8d), region = 24  ;;  %s291_s24 = sshll.u32 (!%p107_p3), %s549_s23, 8 }
  0x30   : > { %s113_s26 = scalar_lea.sflag (!%p107_p3), [#allocation3], %s549_s23  ;;  %s553_s30 = scalar_lea.vmem (!%p107_p3), [#allocation2], %s291_s24 }
  0x34   : > { %415 = dma.done.wait (%p636_p6), %s113_s26, 4096  }
  0x35   : > { %417 = vsyncadd (%p636_p6), %s113_s26, 4294963200  ;;  %v135_v0 = vld [vmem:[%s553_s30] sm:$0xff]  ;;  %v136_v1 = vld [vmem:[%s553_s30 + $0x8] sm:$0xff]  ;;  %s133_s17 = scalar_lea.vmem [#allocation5], %s549_s23  ;;  %s292_s27 = sshll.u32 %s473_s10, 4 }
  0x36   : > { %v137_v2 = vld [vmem:[%s553_s30 + $0x10] sm:$0xff]  ;;  %v167_v3 = vadd.f32 %v136_v1, %v135_v0  ;;  %v138_v4 = vld [vmem:[%s553_s30 + $0x18] sm:$0xff]  ;;  %v139_v6 = vld [vmem:[%s553_s30 + $0x20] sm:$0xff]  ;;  %s218_s25 = sshll.u32 %s133_s17, 4  ;;  %s216_s2 = scalar_lea.hbm %s628_s1, %s292_s27  ;;  %s219_s25 = int_to_ptr.vmem [resolvable:$true] %s218_s25 }
  0x37   : > { %v140_v8 = vld [vmem:[%s553_s30 + $0x28] sm:$0xff]  ;;  %v141_v10 = vld [vmem:[%s553_s30 + $0x30] sm:$0xff]  ;;  %v142_v12 = vld [vmem:[%s553_s30 + $0x38] sm:$0xff]  ;;  %s206_s3 = scalar_lea.sflag [#allocation4], %s549_s23  ;;  %s372_s4 = scalar_lea.vmem %s219_s25, 16 }
  0x38   : > { %v168_v5 = vadd.f32 %v167_v3, %v137_v2  ;;  %v143_v14 = vld [vmem:[%s553_s30 + $0x40] sm:$0xff]  ;;  %v144_v16 = vld [vmem:[%s553_s30 + $0x48] sm:$0xff]  ;;  %v145_v18 = vld [vmem:[%s553_s30 + $0x50] sm:$0xff]  ;;  %p373_p11 = scmp.ne.s32.totalorder %s219_s25, %s372_s4  ;;  %p637_p12 = scmp.ne.s32.totalorder %s633_s18, 0 }
  0x39   : > { %v146_v20 = vld [vmem:[%s553_s30 + $0x58] sm:$0xff]  ;;  %v147_v22 = vld [vmem:[%s553_s30 + $0x60] sm:$0xff]  ;;  %v148_v24 = vld [vmem:[%s553_s30 + $0x68] sm:$0xff]  ;;  %s441_s5 = smov [#allocation5]  }
  0x3a   : > { %v169_v7 = vadd.f32 %v168_v5, %v138_v4  ;;  %v149_v26 = vld [vmem:[%s553_s30 + $0x70] sm:$0xff]  ;;  %v150_v28 = vld [vmem:[%s553_s30 + $0x78] sm:$0xff]  ;;  %v151_v30 = vld [vmem:[%s553_s30 + $0x80] sm:$0xff]  ;;  %p374_p13 = pnand %p373_p11, %p637_p12  ;;  %s376_s11 = sshll.u32 %s441_s5, 4  ;;  %s377_s11 = int_to_ptr.vmem [resolvable:$false] %s376_s11 }
  0x3b   : > { %v152_v32 = vld [vmem:[%s553_s30 + $0x88] sm:$0xff]  ;;  %v153_v34 = vld [vmem:[%s553_s30 + $0x90] sm:$0xff]  ;;  %v154_v36 = vld [vmem:[%s553_s30 + $0x98] sm:$0xff]  ;;  %s378_s13 = scalar_lea.vmem %s377_s11, 32  ;;  %p379_p5 = scmp.lt.s32.totalorder %s219_s25, %s377_s11 }
  0x3c   : > { %v170_v9 = vadd.f32 %v169_v7, %v139_v6  ;;  %v155_v38 = vld [vmem:[%s553_s30 + $0xa0] sm:$0xff]  ;;  %v156_v40 = vld [vmem:[%s553_s30 + $0xa8] sm:$0xff]  ;;  %v157_v42 = vld [vmem:[%s553_s30 + $0xb0] sm:$0xff]  ;;  %p375_p4 = pneg %p374_p13  ;;  %p380_p7 = scmp.lt.s32.totalorder %s378_s13, %s372_s4 }
  0x3d   : > { %v158_v44 = vld [vmem:[%s553_s30 + $0xb8] sm:$0xff]  ;;  %v159_v46 = vld [vmem:[%s553_s30 + $0xc0] sm:$0xff]  ;;  %v160_v48 = vld [vmem:[%s553_s30 + $0xc8] sm:$0xff] }
  0x3e   : > { %v171_v11 = vadd.f32 %v170_v9, %v140_v8  ;;  %v161_v50 = vld [vmem:[%s553_s30 + $0xd0] sm:$0xff]  ;;  %v162_v52 = vld [vmem:[%s553_s30 + $0xd8] sm:$0xff]  ;;  %v163_v54 = vld [vmem:[%s553_s30 + $0xe0] sm:$0xff]  ;;  %p381_p8 = por %p380_p7, %p379_p5 }
  0x3f   : > { %v164_v56 = vld [vmem:[%s553_s30 + $0xe8] sm:$0xff]  ;;  %v165_v58 = vld [vmem:[%s553_s30 + $0xf0] sm:$0xff]  ;;  %v166_v60 = vld [vmem:[%s553_s30 + $0xf8] sm:$0xff] }
  0x40   : > { %v172_v13 = vadd.f32 %v171_v11, %v141_v10  ;;  %p382_p10 = pnand %p381_p8, %p375_p4 }
  0x42   : > { %v173_v15 = vadd.f32 %v172_v13, %v142_v12 }
  0x44   : > { %v174_v17 = vadd.f32 %v173_v15, %v143_v14 }
  0x46   : > { %v175_v19 = vadd.f32 %v174_v17, %v144_v16 }
  0x48   : > { %v176_v21 = vadd.f32 %v175_v19, %v145_v18 }
  0x4a   : > { %v177_v23 = vadd.f32 %v176_v21, %v146_v20 }
  0x4c   : > { %v178_v25 = vadd.f32 %v177_v23, %v147_v22 }
  0x4e   : > { %v179_v27 = vadd.f32 %v178_v25, %v148_v24 }
  0x50   : > { %v180_v29 = vadd.f32 %v179_v27, %v149_v26 }
  0x52   : > { %v181_v31 = vadd.f32 %v180_v29, %v150_v28 }
  0x54   : > { %v182_v33 = vadd.f32 %v181_v31, %v151_v30 }
  0x56   : > { %v183_v35 = vadd.f32 %v182_v33, %v152_v32 }
  0x58   : > { %v184_v37 = vadd.f32 %v183_v35, %v153_v34 }
  0x5a   : > { %v185_v39 = vadd.f32 %v184_v37, %v154_v36 }
  0x5c   : > { %v186_v41 = vadd.f32 %v185_v39, %v155_v38 }
  0x5e   : > { %v187_v43 = vadd.f32 %v186_v41, %v156_v40 }
  0x60   : > { %v188_v45 = vadd.f32 %v187_v43, %v157_v42 }
  0x62   : > { %v189_v47 = vadd.f32 %v188_v45, %v158_v44 }
  0x64   : > { %v190_v49 = vadd.f32 %v189_v47, %v159_v46 }
  0x66   : > { %v191_v51 = vadd.f32 %v190_v49, %v160_v48 }
  0x68   : > { %v192_v53 = vadd.f32 %v191_v51, %v161_v50 }
  0x6a   : > { %v193_v55 = vadd.f32 %v192_v53, %v162_v52 }
  0x6c   : > { %v194_v57 = vadd.f32 %v193_v55, %v163_v54 }
  0x6e   : > { %v195_v59 = vadd.f32 %v194_v57, %v164_v56 }
  0x70   : > { %v196_v61 = vadd.f32 %v195_v59, %v165_v58 }
  0x72   : > { %v197_v62 = vadd.f32 %v196_v61, %v166_v60 }
  0x74   : > { %v198_v63 = vrot.slane %v197_v62, 4 }
  0x76   : > { %v199_v0 = vadd.f32 %v198_v63, %v197_v62 }
  0x78   : > { %v200_v1 = vrot.slane %v199_v0, 2 }
  0x7a   : > { %v201_v2 = vadd.f32 %v200_v1, %v199_v0 }
  0x7c   : > { %v202_v3 = vrot.slane %v201_v2, 1 }
  0x7e   : > { %v203_v4 = vadd.f32 %v202_v3, %v201_v2 }
  0x80   : > { %204 = vst [vmem:[%s133_s17] sm:$0x1] %v203_v4 }
  0x81   : > { %385 = shalt.err (!%p382_p10)
}
  0x82   : > { %s386_s10 = scalar_lea.hbm %s216_s2, 16  ;;  %s390_s20 = scalar_lea.hbm %s628_s1, 32 }
  0x83   : > { %p387_p0 = scmp.ne.s32.totalorder %s216_s2, %s386_s10  ;;  %p391_p1 = scmp.lt.s32.totalorder %s216_s2, %s628_s1 }
  0x84   : > { %p392_p3 = scmp.lt.s32.totalorder %s390_s20, %s386_s10 }
  0x85   : > { %p388_p2 = pnand %p387_p0, %p637_p12 }
  0x86   : > { %p393_p6 = por %p392_p3, %p391_p1 }
  0x87   : > { %p389_p9 = pneg %p388_p2 }
  0x89   : > { %p394_p11 = pnand %p393_p6, %p389_p9 }
  0x8b   : > { %397 = shalt.err (!%p394_p11)
}
  0x8c   : > { %298 = dma.vmem_to_hbm [thread:$0]  (%p637_p12), %s219_s25, 16, %s216_s2, %s206_s3  }
  0x8d PF: > { %s230_s23 = sand.u32 1, %s424_s6   ;;  %p638_p13 = scmp.ne.s32.totalorder %s634_s19, 0 }
  0x8e   : > { %p639_p4 = scmp.ge.s32.totalorder %s436_s9, 2  ;;  %s231_s24 = scalar_lea.sflag [#allocation4], %s230_s23 }
  0x90   : > { %p305_p5 = pnand %p639_p4, %p638_p13 }
  0x92   : > { %p306_p7 = pneg %p305_p5 }
  0x94   : > { %419 = dma.done.wait (%p306_p7), %s231_s24, 16  }
  0x95   : > { %421 = vsyncadd (%p306_p7), %s231_s24, 4294967280  ;;  %p14_p8 = scmp.ge.s32.totalorder %s477_s12, 4   ;;  %s640_s6 = smov %s428_s7 }
  0x96   : > { %s641_s7 = smov %s432_s8  ;;  %s642_s8 = smov %s489_s15 }
  0x97   : > { %s643_s9 = smov %s477_s12  ;;  %16 = sbr.rel (!%p14_p8) target bundleno = 5 (0x5), region = 69 }
  0x9c   :  { %235 = vsyncpa [#allocation3], 1 }
  0x9d   :  { %237 = vsyncpa [#allocation3 + $0x1], 1 }
  0x9e   :  { %238 = vsyncpa [#allocation4], 1 }
  0x9f   :  { %240 = vsyncpa [#allocation4 + $0x1], 1 }

</bundles_post_ra>
